<compile_context>
chip_gen: v5e
topology: v5e:2x2
jax: 0.10.0
libtpu: 0.0.40
codegen_flags: <defaults>
</compile_context>

<pallas_src>
import jax
import jax.numpy as jnp
import numpy as np
from jax.experimental import pallas as pl
from jax.experimental.pallas import tpu as pltpu


def _tesnet_head_kernel(x_ref, p_ref, proj_ref, projmax_ref, cosmin_ref):
    # x_ref:       (tile_rows, D)      pixels x channels for this (batch, tile)
    # p_ref:       (D, P_pad)          L2-normalized prototypes (lane-padded)
    # proj_ref:    (tile_rows, P_pad)  project distances for this tile
    # projmax_ref: (8, P_pad)          running max accumulator (row 0 live)
    # cosmin_ref:  (8, P_pad)          running min accumulator (row 0 live)
    t = pl.program_id(1)

    @pl.when(t == 0)
    def _init():
        projmax_ref[...] = jnp.full(projmax_ref.shape, -jnp.inf, jnp.float32)
        cosmin_ref[...] = jnp.full(cosmin_ref.shape, jnp.inf, jnp.float32)

    x = x_ref[...]                                                 # (tile, D)
    p_n = p_ref[...]                                               # (D, P_pad)

    # _project2basis: 1x1 conv == matmul with normalized prototypes (MXU).
    proj = jnp.dot(x, p_n, preferred_element_type=jnp.float32)     # (tile, P_pad)
    proj_ref[...] = proj

    # _cosine_convolution: -(normalize(x) @ p_n) == -proj / max(||x||, eps).
    # F.normalize uses eps = 1e-12  ->  max(sum(x^2), eps^2) under the rsqrt.
    sumsq = jnp.sum(x * x, axis=-1, keepdims=True)                 # (tile, 1)
    inv_norm = jax.lax.rsqrt(jnp.maximum(sumsq, 1e-24))            # EUP rsqrt
    cos = -proj * inv_norm                                         # (tile, P_pad)

    # Running global max / min pooling over the spatial (sublane) axis.
    tile_max = jnp.max(proj, axis=0, keepdims=True)                # (1, P_pad)
    tile_min = jnp.min(cos, axis=0, keepdims=True)
    projmax_ref[0:1, :] = jnp.maximum(projmax_ref[0:1, :], tile_max)
    cosmin_ref[0:1, :] = jnp.minimum(cosmin_ref[0:1, :], tile_min)


def _pick_tile_rows(hw, cap=512):
    """Largest multiple of 8 that divides hw and is <= cap; fallback hw."""
    best = None
    t = 8
    while t <= min(hw, cap):
        if hw % t == 0:
            best = t
        t += 8
    return best if best is not None else hw


def tesnet_head_forward(conv_features, prototype_vectors, last_layer_weight,
                        prototype_class_identity=None, *, tile_rows=None):
    """conv_features: (B, D, H, W); prototype_vectors: (P, D, 1, 1);
    last_layer_weight: (C, P).

    Returns (project_distances (B, P, H, W), logits (B, C),
             cosine_min_distances (B, P), prototype_class_identity),
    matching TesNet_head.forward (share_add_ons=True path).
    """
    B, D, H, W = conv_features.shape
    P = prototype_vectors.shape[0]
    HW = H * W
    P_pad = ((P + 127) // 128) * 128

    if tile_rows is None:
        tile_rows = _pick_tile_rows(HW)
    if HW % tile_rows != 0:
        tile_rows = HW
    T = HW // tile_rows

    # NCHW -> (B, HW, D): rows = pixels (sublanes), lanes = channels.
    # TODO(synk): if the consumer accepts NHWC / (B, HW, P) layouts, this
    # transpose and the project_distances transpose below (both XLA-side HBM
    # transposes) can be skipped entirely.
    x = jnp.transpose(conv_features, (0, 2, 3, 1)).reshape(B, HW, D)
    x = x.astype(jnp.float32)

    # Hoisted prototype normalization (F.normalize, eps=1e-12), zero-padded to
    # a multiple of 128 lanes so kernel stores are lane-dense.
    p2 = prototype_vectors.reshape(P, D).astype(jnp.float32)
    p_norm = jnp.sqrt(jnp.sum(p2 * p2, axis=1, keepdims=True))
    p_n = p2 / jnp.maximum(p_norm, 1e-12)                           # (P, D)
    p_n_pad = jnp.zeros((D, P_pad), jnp.float32).at[:, :P].set(p_n.T)

    # Explicit VMEM budget: double-buffered x + proj tiles, prototypes,
    # accumulators, plus headroom; safe on v5e/v6e (128 MiB) and v7x (64 MiB).
    vmem_est = 4 * (2 * tile_rows * (D + P_pad) + 2 * D * P_pad + 8 * 8 * P_pad)
    vmem_limit = int(min(max(4 * vmem_est, 16 * 1024 * 1024), 48 * 1024 * 1024))

    proj_pad, projmax_pad, cosmin_pad = pl.pallas_call(
        _tesnet_head_kernel,
        grid=(B, T),
        in_specs=[
            pl.BlockSpec((None, tile_rows, D), lambda b, t: (b, t, 0)),
            pl.BlockSpec((D, P_pad), lambda b, t: (0, 0)),
        ],
        out_specs=(
            pl.BlockSpec((None, tile_rows, P_pad), lambda b, t: (b, t, 0)),
            pl.BlockSpec((None, 8, P_pad), lambda b, t: (b, 0, 0)),
            pl.BlockSpec((None, 8, P_pad), lambda b, t: (b, 0, 0)),
        ),
        out_shape=(
            jax.ShapeDtypeStruct((B, HW, P_pad), jnp.float32),
            jax.ShapeDtypeStruct((B, 8, P_pad), jnp.float32),
            jax.ShapeDtypeStruct((B, 8, P_pad), jnp.float32),
        ),
        compiler_params=pltpu.CompilerParams(
            dimension_semantics=("parallel", "arbitrary"),
            vmem_limit_bytes=vmem_limit),
    )(x, p_n_pad)

    # Slice off lane padding; restore PyTorch NCHW conv-output layout.
    proj = proj_pad[:, :, :P]                                       # (B, HW, P)
    project_distances = jnp.transpose(proj.reshape(B, H, W, P), (0, 3, 1, 2))
    projmax = projmax_pad[:, 0, :P]                                 # (B, P)
    cosine_min_distances = cosmin_pad[:, 0, :P]                     # (B, P)

    # last_layer (Linear, no bias): tiny (B,P)@(P,C) -- leave it to XLA.
    logits = jnp.dot(projmax, last_layer_weight.T,
                     precision=jax.lax.Precision.HIGHEST)

    return project_distances, logits, cosine_min_distances, prototype_class_identity


def make_params(key, num_prototypes, channels, num_classes, incorrect_weight=-0.5):
    # prototype_vectors = torch.rand(prototype_shape)  (uniform [0, 1))
    prototype_vectors = jax.random.uniform(
        key, (num_prototypes, channels, 1, 1), dtype=jnp.float32)
    # prototype_class_identity + set_last_layer_incorrect_connection
    per_class = num_prototypes // num_classes
    proto_ids = jnp.arange(num_prototypes) // per_class
    class_identity = (proto_ids[:, None] == jnp.arange(num_classes)[None, :]).astype(jnp.float32)
    pos = class_identity.T                               # (C, P)
    last_layer_weight = 1.0 * pos + incorrect_weight * (1.0 - pos)
    return prototype_vectors, last_layer_weight, class_identity


if __name__ == "__main__":
    B, D, H, W = 2, 32, 16, 16
    P, C = 40, 4

    key = jax.random.PRNGKey(0)
    kx, kp = jax.random.split(key)
    conv_features = jax.random.normal(kx, (B, D, H, W), dtype=jnp.float32)
    prototype_vectors, last_layer_weight, class_identity = make_params(kp, P, D, C)

    # tile_rows=64 with HW=256 gives a 4-step reduction axis (exercises the
    # running max/min accumulator path).
    outs = tesnet_head_forward(conv_features, prototype_vectors, last_layer_weight,
                               prototype_class_identity=class_identity, tile_rows=64)
    project_distances, logits, cosine_min_distances, proto_id = jax.block_until_ready(outs)

    # Pure-JAX reference of the forward semantics (full f32 precision).
    hi = jax.lax.Precision.HIGHEST
    p2 = prototype_vectors.reshape(P, D)
    p_n = p2 / jnp.maximum(jnp.linalg.norm(p2, axis=1, keepdims=True), 1e-12)
    x_n = conv_features / jnp.maximum(
        jnp.linalg.norm(conv_features, axis=1, keepdims=True), 1e-12)
    proj_ref = jnp.einsum("bdhw,pd->bphw", conv_features, p_n, precision=hi)
    cos_ref = -jnp.einsum("bdhw,pd->bphw", x_n, p_n, precision=hi)
    cosmin_ref = jnp.min(cos_ref.reshape(B, P, -1), axis=-1)
    projmax_ref = jnp.max(proj_ref.reshape(B, P, -1), axis=-1)
    logits_ref = jnp.dot(projmax_ref, last_layer_weight.T, precision=hi)

    np.testing.assert_allclose(np.asarray(project_distances), np.asarray(proj_ref),
                               rtol=1e-5, atol=1e-5)
    np.testing.assert_allclose(np.asarray(cosine_min_distances), np.asarray(cosmin_ref),
                               rtol=1e-5, atol=1e-5)
    np.testing.assert_allclose(np.asarray(logits), np.asarray(logits_ref),
                               rtol=1e-5, atol=1e-5)

    # Forward also returns prototype_class_identity (a constant buffer).
    assert proto_id.shape == (P, C)

    print("KERNEL_OK")
</pallas_src>

<mosaic_0001>
module attributes {stable_mosaic.version = 11 : i64} {
  func.func @_tesnet_head_kernel(%arg0: i32, %arg1: i32, %arg2: memref<1x64x32xf32, #tpu.memory_space<vmem>>, %arg3: memref<32x128xf32, #tpu.memory_space<vmem>>, %arg4: memref<1x64x128xf32, #tpu.memory_space<vmem>>, %arg5: memref<1x8x128xf32, #tpu.memory_space<vmem>>, %arg6: memref<1x8x128xf32, #tpu.memory_space<vmem>>) attributes {dimension_semantics = [#tpu.dimension_semantics<parallel>, #tpu.dimension_semantics<arbitrary>], iteration_bounds = array<i64: 2, 4>, scalar_prefetch = 0 : i64, scratch_operands = 0 : i64, tpu.core_type = #tpu.core_type<tc>, window_params = [{transform_indices = @transform_0, window_bounds = array<i64: 1, 64, 32>}, {pipeline_mode = #tpu.pipeline_mode<synchronous>, transform_indices = @transform_1, window_bounds = array<i64: 32, 128>}, {transform_indices = @transform_2, window_bounds = array<i64: 1, 64, 128>}, {transform_indices = @transform_3, window_bounds = array<i64: 1, 8, 128>}, {transform_indices = @transform_4, window_bounds = array<i64: 1, 8, 128>}]} {
    %c0_i32 = arith.constant 0 : i32
    %0 = arith.cmpi eq, %arg1, %c0_i32 : i32
    %1 = arith.extui %0 : i1 to i32
    %c0_i32_0 = arith.constant 0 : i32
    %2 = arith.cmpi ne, %1, %c0_i32_0 : i32
    scf.if %2 {
      %cst_25 = arith.constant 0xFF800000 : f32
      %36 = vector.broadcast %cst_25 : f32 to vector<8x128xf32>
      %c0_26 = arith.constant 0 : index
      %c0_27 = arith.constant 0 : index
      %c0_28 = arith.constant 0 : index
      %37 = vector.load %arg5[%c0_26, %c0_27, %c0_28] : memref<1x8x128xf32, #tpu.memory_space<vmem>>, vector<1x8x128xf32>
      %38 = vector.shape_cast %37 : vector<1x8x128xf32> to vector<8x128xf32>
      %39 = vector.shape_cast %36 : vector<8x128xf32> to vector<1x8x128xf32>
      tpu.vector_store %arg5[%c0_26, %c0_27, %c0_28], %39 {strides = array<i32>} : memref<1x8x128xf32, #tpu.memory_space<vmem>>, vector<1x8x128xf32>,
      %cst_29 = arith.constant 0x7F800000 : f32
      %40 = vector.broadcast %cst_29 : f32 to vector<8x128xf32>
      %c0_30 = arith.constant 0 : index
      %c0_31 = arith.constant 0 : index
      %c0_32 = arith.constant 0 : index
      %41 = vector.load %arg6[%c0_30, %c0_31, %c0_32] : memref<1x8x128xf32, #tpu.memory_space<vmem>>, vector<1x8x128xf32>
      %42 = vector.shape_cast %41 : vector<1x8x128xf32> to vector<8x128xf32>
      %43 = vector.shape_cast %40 : vector<8x128xf32> to vector<1x8x128xf32>
      tpu.vector_store %arg6[%c0_30, %c0_31, %c0_32], %43 {strides = array<i32>} : memref<1x8x128xf32, #tpu.memory_space<vmem>>, vector<1x8x128xf32>,
    } else {
    }
    %c0 = arith.constant 0 : index
    %c0_1 = arith.constant 0 : index
    %c0_2 = arith.constant 0 : index
    %3 = vector.load %arg2[%c0, %c0_1, %c0_2] : memref<1x64x32xf32, #tpu.memory_space<vmem>>, vector<1x64x32xf32>
    %4 = vector.shape_cast %3 : vector<1x64x32xf32> to vector<64x32xf32>
    %c0_3 = arith.constant 0 : index
    %c0_4 = arith.constant 0 : index
    %5 = vector.load %arg3[%c0_3, %c0_4] : memref<32x128xf32, #tpu.memory_space<vmem>>, vector<32x128xf32>
    %cst = arith.constant dense<0.000000e+00> : vector<64x128xf32>
    %6 = tpu.matmul %4, %5, %cst {dimension_numbers = #tpu.dot_dimension_numbers<[1], [0], [0], [1], [0, 0, 1, 1], [], []>} : vector<64x32xf32>, vector<32x128xf32>, vector<64x128xf32> -> vector<64x128xf32>
    %c0_5 = arith.constant 0 : index
    %c0_6 = arith.constant 0 : index
    %c0_7 = arith.constant 0 : index
    %7 = vector.load %arg4[%c0_5, %c0_6, %c0_7] : memref<1x64x128xf32, #tpu.memory_space<vmem>>, vector<1x64x128xf32>
    %8 = vector.shape_cast %7 : vector<1x64x128xf32> to vector<64x128xf32>
    %9 = vector.shape_cast %6 : vector<64x128xf32> to vector<1x64x128xf32>
    tpu.vector_store %arg4[%c0_5, %c0_6, %c0_7], %9 {strides = array<i32>} : memref<1x64x128xf32, #tpu.memory_space<vmem>>, vector<1x64x128xf32>,
    %10 = arith.mulf %4, %4 : vector<64x32xf32>
    %cst_8 = arith.constant dense<0.000000e+00> : vector<64xf32>
    %11 = vector.multi_reduction <add>, %10, %cst_8 [1] : vector<64x32xf32> to vector<64xf32>
    %12 = vector.shape_cast %11 : vector<64xf32> to vector<64x1xf32>
    %cst_9 = arith.constant 1.000000e-24 : f32
    %13 = vector.broadcast %cst_9 : f32 to vector<64x1xf32>
    %14 = arith.maximumf %12, %13 : vector<64x1xf32>
    %15 = math.rsqrt %14 : vector<64x1xf32>
    %cst_10 = arith.constant 0.000000e+00 : f32
    %16 = vector.broadcast %cst_10 : f32 to vector<64x128xf32>
    %17 = arith.subf %16, %6 : vector<64x128xf32>
    %18 = vector.broadcast %15 : vector<64x1xf32> to vector<64x128xf32>
    %19 = arith.mulf %17, %18 : vector<64x128xf32>
    %cst_11 = arith.constant dense<0xFF800000> : vector<128xf32>
    %20 = vector.multi_reduction <maximumf>, %6, %cst_11 [0] : vector<64x128xf32> to vector<128xf32>
    %21 = vector.shape_cast %20 : vector<128xf32> to vector<1x128xf32>
    %cst_12 = arith.constant dense<0x7F800000> : vector<128xf32>
    %22 = vector.multi_reduction <minimumf>, %19, %cst_12 [0] : vector<64x128xf32> to vector<128xf32>
    %23 = vector.shape_cast %22 : vector<128xf32> to vector<1x128xf32>
    %c0_13 = arith.constant 0 : index
    %c0_14 = arith.constant 0 : index
    %c0_15 = arith.constant 0 : index
    %24 = vector.load %arg5[%c0_13, %c0_14, %c0_15] : memref<1x8x128xf32, #tpu.memory_space<vmem>>, vector<1x1x128xf32>
    %25 = vector.shape_cast %24 : vector<1x1x128xf32> to vector<1x128xf32>
    %26 = arith.maximumf %25, %21 : vector<1x128xf32>
    %c0_16 = arith.constant 0 : index
    %c0_17 = arith.constant 0 : index
    %c0_18 = arith.constant 0 : index
    %27 = vector.load %arg5[%c0_16, %c0_17, %c0_18] : memref<1x8x128xf32, #tpu.memory_space<vmem>>, vector<1x1x128xf32>
    %28 = vector.shape_cast %27 : vector<1x1x128xf32> to vector<1x128xf32>
    %29 = vector.shape_cast %26 : vector<1x128xf32> to vector<1x1x128xf32>
    tpu.vector_store %arg5[%c0_16, %c0_17, %c0_18], %29 {strides = array<i32>} : memref<1x8x128xf32, #tpu.memory_space<vmem>>, vector<1x1x128xf32>,
    %c0_19 = arith.constant 0 : index
    %c0_20 = arith.constant 0 : index
    %c0_21 = arith.constant 0 : index
    %30 = vector.load %arg6[%c0_19, %c0_20, %c0_21] : memref<1x8x128xf32, #tpu.memory_space<vmem>>, vector<1x1x128xf32>
    %31 = vector.shape_cast %30 : vector<1x1x128xf32> to vector<1x128xf32>
    %32 = arith.minimumf %31, %23 : vector<1x128xf32>
    %c0_22 = arith.constant 0 : index
    %c0_23 = arith.constant 0 : index
    %c0_24 = arith.constant 0 : index
    %33 = vector.load %arg6[%c0_22, %c0_23, %c0_24] : memref<1x8x128xf32, #tpu.memory_space<vmem>>, vector<1x1x128xf32>
    %34 = vector.shape_cast %33 : vector<1x1x128xf32> to vector<1x128xf32>
    %35 = vector.shape_cast %32 : vector<1x128xf32> to vector<1x1x128xf32>
    tpu.vector_store %arg6[%c0_22, %c0_23, %c0_24], %35 {strides = array<i32>} : memref<1x8x128xf32, #tpu.memory_space<vmem>>, vector<1x1x128xf32>,
    return
  }
  func.func @transform_0(%arg0: i32, %arg1: i32) -> (i32, i32, i32) {
    %c0_i32 = arith.constant 0 : i32
    %c0_i32_0 = arith.constant 0 : i32
    return %arg0, %arg1, %c0_i32 : i32, i32, i32
  }
  func.func @transform_1(%arg0: i32, %arg1: i32) -> (i32, i32) {
    %c0_i32 = arith.constant 0 : i32
    %c0_i32_0 = arith.constant 0 : i32
    %c0_i32_1 = arith.constant 0 : i32
    return %c0_i32, %c0_i32_0 : i32, i32
  }
  func.func @transform_2(%arg0: i32, %arg1: i32) -> (i32, i32, i32) {
    %c0_i32 = arith.constant 0 : i32
    %c0_i32_0 = arith.constant 0 : i32
    return %arg0, %arg1, %c0_i32 : i32, i32, i32
  }
  func.func @transform_3(%arg0: i32, %arg1: i32) -> (i32, i32, i32) {
    %c0_i32 = arith.constant 0 : i32
    %c0_i32_0 = arith.constant 0 : i32
    %c0_i32_1 = arith.constant 0 : i32
    return %arg0, %c0_i32, %c0_i32_0 : i32, i32, i32
  }
  func.func @transform_4(%arg0: i32, %arg1: i32) -> (i32, i32, i32) {
    %c0_i32 = arith.constant 0 : i32
    %c0_i32_0 = arith.constant 0 : i32
    %c0_i32_1 = arith.constant 0 : i32
    return %arg0, %c0_i32, %c0_i32_0 : i32, i32, i32
  }
}

</mosaic_0001>

<bundles_post_ra>
// kernel: tpu_custom_call.1
= control target key start
LH: loop header
LB: loop body
LE: loop exit
PB: predicated region body
PF: predicated region fallthrough
CT: control target
= control target key end

     0   :  { %10 = vsyncpa [#allocation3], 0  ;;  %s1605_s0 = inlined_call_operand.vmem [shape: f32[2,256,32], index: 0, kind: input, shape index: {}]   ;;  %s1606_s1 = inlined_call_operand.vmem [shape: f32[32,128], index: 1, kind: input, shape index: {}]   ;;  %s1607_s2 = inlined_call_operand.hbm [shape: f32[2,256,128], index: 2, kind: output, shape index: {0}]   ;;  %s1608_s3 = inlined_call_operand.hbm [shape: f32[2,8,128], index: 3, kind: output, shape index: {1}]   ;;  %s1609_s4 = inlined_call_operand.hbm [shape: f32[2,8,128], index: 4, kind: output, shape index: {2}]  }
   0x1   :  { %12 = vsyncpa [#allocation3 + $0x1], 0 }
   0x2   :  { %13 = vsyncpa [#allocation5], 0 }
   0x3   :  { %15 = vsyncpa [#allocation5 + $0x1], 0  ;;  %s1082_s15 = smov 0   ;;  %s1084_s16 = smov 0  }
   0x4   :  { %s1086_s17 = smov 0   ;;  %s1088_s18 = smov 0  }
   0x5   :  { %s1090_s19 = smov 0   ;;  %s1092_s20 = smov 0  }
   0x6   :  { %s1094_s21 = smov 0   ;;  %s1096_s22 = smov 0  }
   0x7   :  { %s1098_s23 = smov 0   ;;  %s1100_s24 = smov 0  }
   0x8   :  { %s1102_s25 = smov 0  }
   0x9 LB: > { %1618 = sst [smem:[#allocation9_spill]] %s1031_s20  ;;  %s1611_s26 = sadd.s32 4294967295, %s1051_s25   ;;  %s1051_s25 = sphi %s1102_s25, %s21_s25   ;;  %s1047_s24 = sphi %s1100_s24, %s1648_s24   ;;  %s1043_s23 = sphi %s1098_s23, %s1647_s23   ;;  %s1039_s22 = sphi %s1096_s22, %s1646_s22   ;;  %s1035_s21 = sphi %s1094_s21, %s1645_s21   ;;  %s1031_s20 = sphi %s1092_s20, %s1644_s20   ;;  %s1027_s19 = sphi %s1090_s19, %s1653_s19   ;;  %s1023_s18 = sphi %s1088_s18, %s1652_s18   ;;  %s1019_s17 = sphi %s1086_s17, %s1651_s17   ;;  %s1015_s16 = sphi %s1084_s16, %s1650_s16   ;;  %s1011_s15 = sphi %s1082_s15, %s1649_s15  }
   0xa   : > { %1619 = sst [smem:[#allocation10_spill]] %s1043_s23  ;;  %s1610_s27 = sadd.s32 4294967294, %s1051_s25  }
   0xb   : > { %1620 = sst [smem:[#allocation11_spill]] %s1047_s24  ;;  %s30_s28 = sadd.s32 1, %s1043_s23 }
   0xc   : > { %s33_s29 = sadd.s32 1, %s1047_s24  ;;  %p31_p0 = scmp.ge.s32.totalorder %s30_s28, 4 }
   0xd   : > { %s91_s30 = sadd.s32 1, %s1031_s20  ;;  %p101_p1 = scmp.ne.s32.totalorder %s1031_s20, %s1027_s19 }
   0xe   : > { %p1146_p2 = scmp.eq.s32.totalorder %s1611_s26, 7  ;;  %s1655_s28 = smov (%p31_p0, %s30_s28), 0 }
   0xf   : > { %1622 = sst [smem:[#allocation12_spill]] %s1655_s28  ;;  %s1657_s29 = smov (!%p31_p0, %s33_s29), %s1047_s24 }
  0x10   : > { %s87_s6 = ssub.s32 %s1043_s23, %s1655_s28  ;;  %p1157_p3 = por %p1146_p2, %p101_p1 }
  0x11   : > { %p35_p4 = scmp.ge.s32.totalorder %s1657_s29, 2  ;;  %p107_p5 = scmp.ne.s32.totalorder %s1027_s19, %s1023_s18 }
  0x12   : > { %p1165_p6 = scmp.eq.s32.totalorder %s1610_s27, 7  ;;  %s117_s9 = sadd.s32 1, %s1019_s17 }
  0x13   : > { %s1659_s29 = smov (%p35_p4, %s1657_s29), 0  ;;  %p127_p8 = scmp.ne.s32.totalorder %s1019_s17, %s1015_s16 }
  0x14   : > { %1625 = sst [smem:[#allocation13_spill]] %s1659_s29  ;;  %p1174_p7 = por %p1165_p6, %p107_p5 }
  0x15   : > { %s86_s11 = ssub.s32 %s1047_s24, %s1659_s29  ;;  %p133_p9 = scmp.ne.s32.totalorder %s1015_s16, %s1011_s15 }
  0x16   : > { %s88_s12 = sor.u32 %s87_s6, %s86_s11  ;;  %p115_p10 = scmp.eq.s32.totalorder %s86_s11, 0 }
  0x17   : > { %p89_p11 = scmp.eq.s32.totalorder %s88_s12, 0  ;;  %p1186_p12 = por %p127_p8, %p1146_p2 }
  0x18   : > { %s1191_s14 = scalar_select %p115_p10, %s1019_s17, %s117_s9  }
  0x19   : > { %s1194_s27 = scalar_select %p89_p11, %s1031_s20, %s91_s30  }
  0x1a   : > { %p1198_p13 = por %p133_p9, %p1165_p6  ;;  %p710_p0 = scmp.ge.s32.totalorder %s1051_s25, 1 }
  0x1b   : > { %1628 = sst [smem:[#allocation14_spill]] %s1194_s27  ;;  %p194_p1 = scmp.lt.s32.totalorder %s1051_s25, 9 }
  0x1d   : > { %p195_p4 = pnand %p710_p0, %p194_p1 }
  0x1e   : > { %s1617_s15 = sand.u32 (!%p195_p4), 1, %s1027_s19   ;;  %s224_s5 = sand.u32 (!%p195_p4), 1, %s1015_s16  }
  0x1f   : > { %198 = sbr.rel (%p195_p4) target bundleno = 240 (0xf0), region = 28  ;;  %s711_s30 = sshll.u32 (!%p195_p4), %s1617_s15, 6 }
  0x20   : > { %s712_s6 = sshll.u32 (!%p195_p4), %s224_s5, 3  ;;  %s1209_s8 = sshll.u32 (!%p195_p4), %s1035_s21, 3 }
  0x21   : > { %p235_p2 = scmp.lt.s32.totalorder (!%p195_p4), %s1039_s22, 1  ;;  %p237_p5 = scmp.lt.s32.totalorder (!%p195_p4), %s1209_s8, 31 }
  0x22   : > { %s1220_s20 = scalar_lea.vmem (!%p195_p4), [#allocation2], %s711_s30  ;;  %s1222_s15 = scalar_lea.vmem (!%p195_p4), [#allocation4], %s712_s6 }
  0x23   : > { %s1224_s5 = scalar_lea.vmem (!%p195_p4), [#allocation6], %s712_s6  ;;  %p717_p6 = scmp.ne.s32.totalorder (!%p195_p4), %s1035_s21, 0 }
  0x24   : > { %s236_s9 = scalar_select %p235_p2, %s1039_s22, 1 }
  0x25   : > { %s238_s11 = scalar_select %p237_p5, %s1209_s8, 31 }
  0x26   : > { %s715_s12 = sshll.u32 %s236_s9, 5  ;;  %248 = sbr.rel (%p717_p6) target bundleno = 46 (0x2e), region = 32 }
  0x27   : > { %s240_s29 = sadd.s32 %s715_s12, %s238_s11 }
  0x28   : > { %s716_s28 = sshll.u32 %s240_s29, 3 }
  0x29   : > { %s1218_s27 = scalar_lea.vmem %s1605_s0, %s716_s28 }
  0x2b   : > { %v1053_v0 = vmov -inf   ;;  %v1054_v1 = vmov inf  }
  0x2c   : > { %249 = vst [vmem:[%s1222_s15] sm:$0xff] %v1053_v0 }
  0x2d   : > { %250 = vst [vmem:[%s1224_s5] sm:$0xff] %v1054_v1 }
  0x2e PF: > { %v262_v2 = vld [vmem:[%s1606_s1 + $0x18] sm:$0xff]  ;;  %v261_v3 = vld [vmem:[%s1606_s1 + $0x10] sm:$0xff]  ;;  %v255_v4 = vld [vmem:[%s1218_s27 + $0x20] sm:$0xff]  ;;  %vm263_vm0 = vcmask 261120   ;;  %s530_s24 = sshll.u32 %s1220_s20, 4  ;;  %s1634_s21 = sand.u32 1, %s1027_s19   ;;  %s1403_s24 = int_to_ptr.vmem [resolvable:$true] %s530_s24 }
  0x2f   : > { %737 = vmatpush.msra.mxu2 %v262_v2  ;;  %738 = vmatpush.msra.mxu3 %v262_v2  ;;  %v341_v5 = vmul.f32 %v255_v4, %v255_v4  ;;  %v253_v6 = vld [vmem:[%s1218_s27 + $0x10] sm:$0xff]  ;;  %v251_v7 = vld [vmem:[%s1218_s27] sm:$0xff]  ;;  %v256_v10 = vld [vmem:[%s1218_s27 + $0x28] sm:$0xff]  ;;  %s506_s30 = scalar_lea.sflag [#allocation3], %s1634_s21 }
  0x30   : > { %v339_v8 = vmul.f32 %v253_v6, %v253_v6  ;;  %v337_v9 = vmul.f32 %v251_v7, %v251_v7  ;;  %300 = vmatpush.msra.mxu0 %v262_v2  ;;  %736 = vmatpush.msra.mxu1 %v262_v2  ;;  %v260_v12 = vld [vmem:[%s1606_s1 + $0x8] sm:$0xff]  ;;  %v254_v13 = vld [vmem:[%s1218_s27 + $0x18] sm:$0xff]  ;;  %v259_v17 = vld [vmem:[%s1606_s1] sm:$0xff]  ;;  %v342_v18 = vmul.f32 %v256_v10, %v256_v10 }
  0x31   : > { %740 = vmatpush.msra.mxu2 %v261_v3  ;;  %741 = vmatpush.msra.mxu3 %v261_v3  ;;  %v357_v11 = vsel %vm263_vm0, %v341_v5, 0.0  ;;  %v252_v16 = vld [vmem:[%s1218_s27 + $0x8] sm:$0xff]  ;;  %v257_v19 = vld [vmem:[%s1218_s27 + $0x30] sm:$0xff]  ;;  %v340_v20 = vmul.f32 %v254_v13, %v254_v13  ;;  %v258_v25 = vld [vmem:[%s1218_s27 + $0x38] sm:$0xff]  ;;  %s730_s27 = sshll.u32 %s1039_s22, 5 }
  0x32   : > { %358 = vadd.xlane.f32.xlu2 %v357_v11  ;;  %v351_v14 = vsel %vm263_vm0, %v339_v8, 0.0  ;;  %v345_v15 = vsel %vm263_vm0, %v337_v9, 0.0  ;;  %301 = vmatpush.msra.mxu0 %v261_v3  ;;  %v338_v21 = vmul.f32 %v252_v16, %v252_v16  ;;  %v360_v22 = vsel %vm263_vm0, %v342_v18, 0.0  ;;  %s1304_s11 = sadd.s32 %s730_s27, %s1209_s8 }
  0x33   : > { %352 = vadd.xlane.f32.xlu1 %v351_v14  ;;  %346 = vadd.xlane.f32.xlu0 %v345_v15  ;;  %v354_v23 = vsel %vm263_vm0, %v340_v20, 0.0  ;;  %v344_v26 = vmul.f32 %v258_v25, %v258_v25  ;;  %v343_v27 = vmul.f32 %v257_v19, %v257_v19  ;;  %s731_s8 = sshll.u32 %s1304_s11, 3 }
  0x34   : > { %743 = vmatpush.msra.mxu2 %v260_v12  ;;  %744 = vmatpush.msra.mxu3 %v260_v12  ;;  %v348_v24 = vsel %vm263_vm0, %v338_v21, 0.0  ;;  %s1344_s23 = scalar_lea.hbm %s1607_s2, %s731_s8 }
  0x35   : > { %739 = vmatpush.msra.mxu1 %v261_v3  ;;  %302 = vmatpush.msra.mxu0 %v260_v12  ;;  %v366_v28 = vsel %vm263_vm0, %v344_v26, 0.0  ;;  %v363_v29 = vsel %vm263_vm0, %v343_v27, 0.0  ;;  %s532_s28 = sshll.u32 %s1344_s23, 4  ;;  %s1415_s28 = int_to_ptr.hbm [resolvable:$true] %s532_s28 }
  0x36   : > { %746 = vmatpush.msra.mxu2 %v259_v17  ;;  %747 = vmatpush.msra.mxu3 %v259_v17  ;;  %s887_s6 = sshra.s32 %s1415_s28, 4  ;;  %s888_s6 = int_to_ptr.hbm [resolvable:$true] %s887_s6 }
  0x37   : > { %722 = vmatmul.msk.f32.vlgmr.msra.gmra.mxu2 %vm263_vm0, %v255_v4  ;;  %724 = vmatmul.msk.f32.vlgmr.msra.gmra.mxu3 %vm263_vm0, %v257_v19  ;;  %s889_s9 = scalar_lea.hbm %s888_s6, 64  ;;  %p894_p11 = scmp.lt.s32.totalorder %s888_s6, %s1607_s2 }
  0x38   : > { %742 = vmatpush.msra.mxu1 %v260_v12  ;;  %303 = vmatpush.msra.mxu0 %v259_v17  ;;  %p890_p8 = scmp.ne.s32.totalorder %s888_s6, %s889_s9 }
  0x39   : > { %718 = vmatmul.msk.f32.vlgmr.msra.gmra.mxu0 %vm263_vm0, %v251_v7 }
  0x3a   : > { %745 = vmatpush.msra.mxu1 %v259_v17  ;;  %361 = vadd.xlane.f32.xlu2 %v360_v22  ;;  %p891_p9 = pnand %p890_p8, %p1157_p3 }
  0x3b   : > { %355 = vadd.xlane.f32.xlu1 %v354_v23  ;;  %720 = vmatmul.msk.f32.vlgmr.msra.gmra.mxu1 %vm263_vm0, %v253_v6 }
  0x3c   : > { %349 = vadd.xlane.f32.xlu0 %v348_v24  ;;  %p892_p10 = pneg %p891_p9 }
  0x3f   : > { %723 = vmatmul.msk.f32.gmra.mxu2 %vm263_vm0, %v256_v10  ;;  %725 = vmatmul.msk.f32.gmra.mxu3 %vm263_vm0, %v258_v25 }
  0x41   : > { %719 = vmatmul.msk.f32.gmra.mxu0 %vm263_vm0, %v252_v16 }
  0x43   : > { %367 = vadd.xlane.f32.xlu1 %v366_v28  ;;  %721 = vmatmul.msk.f32.gmra.mxu1 %vm263_vm0, %v254_v13 }
  0x44   : > { %364 = vadd.xlane.f32.xlu0 %v363_v29 }
  0xa5   : > { %v359_v30 = vpop.xlane.xlu2 %358 }
  0xa6   : > { %v1265_v31 = vmax.f32 %v359_v30, 1e-24  ;;  %v353_v32 = vpop.xlane.xlu1 %352  ;;  %v347_v33 = vpop.xlane.xlu0 %346 }
  0xa7   : > { %v1267_v34 = vmax.f32 %v353_v32, 1e-24  ;;  %v1269_v35 = vmax.f32 %v347_v33, 1e-24 }
  0xa8   : > { %857 = vrsqrt.f32 %v1265_v31  ;;  %vm423_vm4 = vweird.f32 %v1265_v31 }
  0xa9   : > { %859 = vrsqrt.f32 %v1267_v34  ;;  %vm403_vm1 = vweird.f32 %v1267_v34  ;;  %vm383_vm2 = vweird.f32 %v1269_v35 }
  0xaa   : > { %861 = vrsqrt.f32 %v1269_v35 }
  0xad   : > { %v362_v36 = vpop.xlane.xlu2 %361 }
  0xae   : > { %v1274_v37 = vpop.eup %857  ;;  %v1276_v38 = vmax.f32 %v362_v36, 1e-24  ;;  %v356_v39 = vpop.xlane.xlu1 %355 }
  0xaf   : > { %v1278_v40 = vpop.eup %859  ;;  %v418_v41 = vmul.f32 %v1274_v37, %v1265_v31  ;;  %v1282_v42 = vmax.f32 %v356_v39, 1e-24  ;;  %v350_v43 = vpop.xlane.xlu0 %349  ;;  %vm424_vm5 = vweird.f32 %v1274_v37 }
  0xb0   : > { %v1284_v44 = vpop.eup %861  ;;  %v398_v45 = vmul.f32 %v1278_v40, %v1267_v34  ;;  %863 = vrsqrt.f32 %v1276_v38  ;;  %v1293_v48 = vmax.f32 %v350_v43, 1e-24  ;;  %vm404_vm3 = vweird.f32 %v1278_v40 }
  0xb1   : > { %v378_v46 = vmul.f32 %v1284_v44, %v1269_v35  ;;  %865 = vrsqrt.f32 %v1282_v42  ;;  %v419_v49 = vmul.f32 %v1274_v37, %v418_v41  ;;  %vm384_vm6 = vweird.f32 %v1284_v44  ;;  %vm1375_vm10 = vmor %vm403_vm1, %vm404_vm3 }
  0xb2   : > { %v399_v47 = vmul.f32 %v1278_v40, %v398_v45  ;;  %867 = vrsqrt.f32 %v1293_v48  ;;  %vm433_vm7 = vweird.f32 %v1276_v38  ;;  %vm413_vm8 = vweird.f32 %v1282_v42  ;;  %vm1390_vm13 = vmor %vm383_vm2, %vm384_vm6 }
  0xb3   : > { %v379_v50 = vmul.f32 %v1284_v44, %v378_v46  ;;  %v420_v57 = vmul.f32 0.5, %v419_v49  ;;  %vm393_vm9 = vweird.f32 %v1293_v48 }
  0xb4   : > { %v400_v51 = vmul.f32 0.5, %v399_v47 }
  0xb5   : > { %v380_v53 = vmul.f32 0.5, %v379_v50  ;;  %v421_v7 = vsub.f32 1.5, %v420_v57 }
  0xb6   : > { %v1299_v52 = vpop.eup %863  ;;  %v368_v54 = vpop.xlane.xlu1 %367  ;;  %v401_v63 = vsub.f32 1.5, %v400_v51 }
  0xb7   : > { %v1301_v55 = vpop.f32.mrf.mxu0  ;;  %v1306_v56 = vpop.eup %865  ;;  %v428_v58 = vmul.f32 %v1299_v52, %v1276_v38  ;;  %v1314_v61 = vmax.f32 %v368_v54, 1e-24  ;;  %v381_v3 = vsub.f32 1.5, %v380_v53  ;;  %v1362_v15 = vmul.f32 %v1274_v37, %v421_v7 }
  0xb8   : > { %v365_v59 = vpop.xlane.xlu0 %364  ;;  %329 = vst [vmem:[%s1220_s20] sm:$0xff] %v1301_v55  ;;  %v408_v60 = vmul.f32 %v1306_v56, %v1282_v42  ;;  %v1316_v62 = vpop.f32.mrf.mxu1  ;;  %v1347_v10 = vmul.f32 %v1278_v40, %v401_v63  ;;  %vm434_vm11 = vweird.f32 %v1299_v52  ;;  %vm414_vm12 = vweird.f32 %v1306_v56 }
  0xb9   : > { %v429_v0 = vmul.f32 %v1299_v52, %v428_v58  ;;  %v1319_v1 = vmax.f32 %v365_v59, 1e-24  ;;  %331 = vst [vmem:[%s1220_s20 + $0x10] sm:$0xff] %v1316_v62  ;;  %v1324_v2 = vpop.eup %867  ;;  %869 = vrsqrt.f32 %v1314_v61  ;;  %v1354_v13 = vmul.f32 %v1284_v44, %v381_v3 }
  0xba   : > { %v409_v4 = vmul.f32 %v1306_v56, %v408_v60  ;;  %v1328_v5 = vpop.f32.mrf.mxu2  ;;  %v1330_v6 = vpop.f32.mrf.mxu3  ;;  %v388_v8 = vmul.f32 %v1324_v2, %v1293_v48  ;;  %v457_v20 = vsub.f32 0.0, %v1301_v55  ;;  %vm453_vm14 = vweird.f32 %v1314_v61 }
  0xbb   : > { %871 = vrsqrt.f32 %v1319_v1  ;;  %333 = vst [vmem:[%s1220_s20 + $0x20] sm:$0xff] %v1328_v5  ;;  %v430_v9 = vmul.f32 0.5, %v429_v0  ;;  %v406_v27 = vsel %vm1375_vm10, %v1278_v40, %v1347_v10  ;;  %vm394_vm15 = vweird.f32 %v1324_v2 }
  0xbc   : > { %335 = vst [vmem:[%s1220_s20 + $0x30] sm:$0xff] %v1330_v6  ;;  %v410_v11 = vmul.f32 0.5, %v409_v4  ;;  %v389_v12 = vmul.f32 %v1324_v2, %v388_v8  ;;  %v386_v29 = vsel %vm1390_vm13, %v1284_v44, %v1354_v13  ;;  %v459_v30 = vsub.f32 0.0, %v1316_v62 }
  0xbd   : > { %v431_v19 = vsub.f32 1.5, %v430_v9  ;;  %v461_v35 = vsub.f32 0.0, %v1328_v5  ;;  %v473_v36 = vmax.f32 %v1301_v55, %v1328_v5  ;;  %v475_v39 = vmax.f32 %v1316_v62, %v1330_v6 }
  0xbe   : > { %v390_v16 = vmul.f32 0.5, %v389_v12  ;;  %v411_v24 = vsub.f32 1.5, %v410_v11 }
  0xbf   : > { %v1358_v14 = vpop.f32.mrf.mxu0  ;;  %v1369_v17 = vpop.eup %869  ;;  %v432_v45 = vmul.f32 %v1299_v52, %v431_v19 }
  0xc0   : > { %330 = vst [vmem:[%s1220_s20 + $0x8] sm:$0xff] %v1358_v14  ;;  %v1382_v21 = vpop.f32.mrf.mxu1  ;;  %v391_v25 = vsub.f32 1.5, %v390_v16  ;;  %v448_v26 = vmul.f32 %v1369_v17, %v1314_v61  ;;  %v412_v49 = vmul.f32 %v1306_v56, %v411_v24 }
  0xc1   : > { %v1384_v22 = vpop.eup %871  ;;  %332 = vst [vmem:[%s1220_s20 + $0x18] sm:$0xff] %v1382_v21 }
  0xc2   : > { %v438_v28 = vmul.f32 %v1384_v22, %v1319_v1  ;;  %v320_v32 = vpop.f32.mrf.mxu2  ;;  %v1413_v33 = vpop.f32.mrf.mxu3  ;;  %v449_v34 = vmul.f32 %v1369_v17, %v448_v26  ;;  %v392_v43 = vmul.f32 %v1324_v2, %v391_v25 }
  0xc3   : > { %334 = vst [vmem:[%s1220_s20 + $0x28] sm:$0xff] %v320_v32  ;;  %v474_v46 = vmax.f32 %v1358_v14, %v320_v32  ;;  %v462_v50 = vsub.f32 0.0, %v320_v32  ;;  %v476_v51 = vmax.f32 %v1382_v21, %v1413_v33 }
  0xc4   : > { %v439_v41 = vmul.f32 %v1384_v22, %v438_v28  ;;  %336 = vst [vmem:[%s1220_s20 + $0x38] sm:$0xff] %v1413_v33  ;;  %v450_v47 = vmul.f32 0.5, %v449_v34  ;;  %s893_s20 = scalar_lea.hbm %s1607_s2, 512 }
  0xc5   : > { %p895_p0 = scmp.lt.s32.totalorder %s893_s20, %s889_s9 }
  0xc7   : > { %p896_p1 = por %p895_p0, %p894_p11 }
  0xc9   : > { %p897_p4 = pnand %p896_p1, %p892_p10 }
  0xcb   : > { %900 = shalt.err (!%p897_p4)
}
  0xcc   : > { %s1055_s29 = smov 128   ;;  %s1056_s23 = smov 8   ;;  %vm1452_vm0 = vmor %vm433_vm7, %vm434_vm11  ;;  %vm454_vm1 = vweird.f32 %v1369_v17  ;;  %v440_v54 = vmul.f32 0.5, %v439_v41  ;;  %v458_v57 = vsub.f32 0.0, %v1358_v14  ;;  %v477_v58 = vmax.f32 %v473_v36, %v474_v46  ;;  %v499_v10 = vld [vmem:[%s1222_s15] sm:$0x1] }
  0xcd   : > { %748 = dma.vmem_to_hbm [thread:$0]  (%p1157_p3), %s1403_s24, 1024, %s1415_s28, %s506_s30, %s1055_s29, %s1055_s29, %s1056_s23   ;;  %vm1462_vm2 = vmor %vm393_vm9, %vm394_vm15  ;;  %v451_v60 = vsub.f32 1.5, %v450_v47  ;;  %vm444_vm3 = vweird.f32 %v1384_v22  ;;  %v460_v38 = vsub.f32 0.0, %v1382_v21  ;;  %v478_v63 = vmax.f32 %v475_v39, %v476_v51 }
  0xce   : > { %vm1472_vm6 = vmor %vm413_vm8, %vm414_vm12  ;;  %v441_v3 = vsub.f32 1.5, %v440_v54  ;;  %v396_v48 = vsel %vm1462_vm2, %v1324_v2, %v392_v43  ;;  %v436_v4 = vsel %vm1452_vm0, %v1299_v52, %v432_v45  ;;  %v464_v5 = vsub.f32 0.0, %v1413_v33  ;;  %s732_s7 = sshll.u32 %s1039_s22, 3  ;;  %s1641_s30 = sadd.s32 4294967295, %s1051_s25  }
  0xcf   : > { %vm425_vm7 = vmor %vm423_vm4, %vm424_vm5  ;;  %v416_v42 = vsel %vm1472_vm6, %v1306_v56, %v412_v49  ;;  %v470_v7 = vmul.f32 %v462_v50, %v436_v4  ;;  %v452_v8 = vmul.f32 %v1369_v17, %v451_v60  ;;  %v479_v9 = vmax.f32 %v477_v58, %v478_v63  ;;  %s545_s21 = scalar_lea.hbm %s1608_s3, %s732_s7  ;;  %s1526_s6 = sand.u32 1, %s1641_s30  }
  0xd0   : > { %vm455_vm8 = vmor %vm453_vm14, %vm454_vm1  ;;  %v442_v52 = vmul.f32 %v1384_v22, %v441_v3  ;;  %vm443_vm9 = vweird.f32 %v1319_v1  ;;  %v426_v31 = vsel %vm425_vm7, %v1274_v37, %v1362_v15  ;;  %v463_v2 = vsub.f32 0.0, %v1330_v6  ;;  %s547_s9 = sshll.u32 %s1222_s15, 4  ;;  %s549_s27 = sshll.u32 %s545_s21, 4  ;;  %s548_s9 = int_to_ptr.vmem [resolvable:$true] %s547_s9  ;;  %s550_s27 = int_to_ptr.hbm [resolvable:$true] %s549_s27 }
  0xd1   : > { %vm445_vm4 = vmor %vm443_vm9, %vm444_vm3  ;;  %v469_v56 = vmul.f32 %v461_v35, %v426_v31  ;;  %v466_v11 = vmul.f32 %v458_v57, %v396_v48  ;;  %v456_v12 = vsel %vm455_vm8, %v1369_v17, %v452_v8  ;;  %v480_v14 = vrot.slane %v479_v9, 4  ;;  %s511_s11 = scalar_lea.sflag [#allocation5], %s1526_s6  ;;  %s915_s20 = sshra.s32 %s550_s27, 4  ;;  %s916_s20 = int_to_ptr.hbm [resolvable:$true] %s915_s20 }
  0xd2   : > { %v465_v61 = vmul.f32 %v457_v20, %v386_v29  ;;  %v446_v37 = vsel %vm445_vm4, %v1384_v22, %v442_v52  ;;  %v468_v1 = vmul.f32 %v460_v38, %v416_v42  ;;  %v472_v6 = vmul.f32 %v464_v5, %v456_v12  ;;  %s917_s8 = scalar_lea.hbm %s916_s20, 8  ;;  %s921_s23 = scalar_lea.hbm %s1608_s3, 16 }
  0xd3   : > { %v467_v15 = vmul.f32 %v459_v30, %v406_v27  ;;  %v471_v16 = vmul.f32 %v463_v2, %v446_v37  ;;  %v487_v44 = vmin.f32 %v466_v11, %v470_v7  ;;  %v481_v55 = vmax.f32 %v479_v9, %v480_v14  ;;  %p918_p3 = scmp.ne.s32.totalorder %s916_s20, %s917_s8  ;;  %p922_p6 = scmp.lt.s32.totalorder %s916_s20, %s1608_s3 }
  0xd4   : > { %v489_v13 = vmin.f32 %v468_v1, %v472_v6  ;;  %v486_v17 = vmin.f32 %v465_v61, %v469_v56  ;;  %p923_p8 = scmp.lt.s32.totalorder %s921_s23, %s917_s8 }
  0xd5   : > { %v488_v19 = vmin.f32 %v467_v15, %v471_v16  ;;  %v482_v20 = vrot.slane %v481_v55, 2  ;;  %p919_p2 = pnand %p918_p3, %p1186_p12 }
  0xd6   : > { %v490_v21 = vmin.f32 %v486_v17, %v487_v44  ;;  %p924_p9 = por %p923_p8, %p922_p6 }
  0xd7   : > { %v491_v18 = vmin.f32 %v488_v19, %v489_v13  ;;  %v483_v22 = vmax.f32 %v481_v55, %v482_v20  ;;  %p920_p5 = pneg %p919_p2 }
  0xd9   : > { %v492_v40 = vmin.f32 %v490_v21, %v491_v18  ;;  %v484_v62 = vrot.slane %v483_v22, 1  ;;  %p925_p10 = pnand %p924_p9, %p920_p5 }
  0xdb   : > { %v493_v23 = vrot.slane %v492_v40, 4  ;;  %v485_v24 = vmax.f32 %v483_v22, %v484_v62 }
  0xdd   : > { %v494_v25 = vmin.f32 %v492_v40, %v493_v23  ;;  %v500_v26 = vmax.f32 %v499_v10, %v485_v24 }
  0xdf   : > { %501 = vst [vmem:[%s1222_s15] sm:$0x1] %v500_v26  ;;  %v495_v27 = vrot.slane %v494_v25, 2 }
  0xe0   : > { %928 = shalt.err (!%p925_p10)
}
  0xe1   : > { %749 = dma.vmem_to_hbm [thread:$0]  (%p1186_p12), %s548_s9, 128, %s550_s27, %s511_s11   ;;  %v496_v28 = vmin.f32 %v494_v25, %v495_v27  ;;  %v502_v30 = vld [vmem:[%s1224_s5] sm:$0x1] }
  0xe2   : > { %s559_s30 = scalar_lea.hbm %s1609_s4, %s732_s7  ;;  %s561_s20 = sshll.u32 %s1224_s5, 4  ;;  %s562_s20 = int_to_ptr.vmem [resolvable:$true] %s561_s20 }
  0xe3   : > { %v497_v29 = vrot.slane %v496_v28, 1  ;;  %s563_s8 = sshll.u32 %s559_s30, 4  ;;  %s949_s7 = scalar_lea.hbm %s1609_s4, 16  ;;  %s564_s8 = int_to_ptr.hbm [resolvable:$true] %s563_s8 }
  0xe4   : > { %s943_s12 = sshra.s32 %s564_s8, 4  ;;  %s944_s12 = int_to_ptr.hbm [resolvable:$true] %s943_s12 }
  0xe5   : > { %v498_v32 = vmin.f32 %v496_v28, %v497_v29  ;;  %s945_s29 = scalar_lea.hbm %s944_s12, 8  ;;  %p950_p4 = scmp.lt.s32.totalorder %s944_s12, %s1609_s4 }
  0xe6   : > { %p946_p11 = scmp.ne.s32.totalorder %s944_s12, %s945_s29  ;;  %p951_p3 = scmp.lt.s32.totalorder %s949_s7, %s945_s29 }
  0xe7   : > { %v503_v33 = vmin.f32 %v502_v30, %v498_v32 }
  0xe8   : > { %p947_p0 = pnand %p946_p11, %p1186_p12  ;;  %p952_p2 = por %p951_p3, %p950_p4 }
  0xe9   : > { %504 = vst [vmem:[%s1224_s5] sm:$0x1] %v503_v33 }
  0xea   : > { %p948_p1 = pneg %p947_p0 }
  0xec   : > { %p953_p5 = pnand %p952_p2, %p948_p1 }
  0xee   : > { %956 = shalt.err (!%p953_p5)
}
  0xef   : > { %750 = dma.vmem_to_hbm [thread:$0]  (%p1186_p12), %s562_s20, 128, %s564_s8, %s511_s11  }
  0xf0 PF: > { %p764_p6 = scmp.ge.s32.totalorder %s1051_s25, 2  ;;  %s575_s5 = sand.u32 1, %s1023_s18  }
  0xf1   : > { %s576_s24 = scalar_lea.sflag [#allocation3], %s575_s5 }
  0xf2   : > { %p755_p8 = pnand %p764_p6, %p1174_p7 }
  0xf4   : > { %p756_p9 = pneg %p755_p8 }
  0xf6   : > { %1002 = dma.done.wait (%p756_p9), %s576_s24, 1024  }
  0xf7   : > { %1004 = vsyncadd (%p756_p9), %s576_s24, 4294966272  ;;  %s1642_s28 = sadd.s32 4294967294, %s1051_s25   ;;  %p758_p10 = pnand %p764_p6, %p1198_p13 }
  0xf8   : > { %s585_s15 = sand.u32 1, %s1642_s28  }
  0xf9   : > { %p759_p11 = pneg %p758_p10  ;;  %s586_s13 = scalar_lea.sflag [#allocation5], %s585_s15 }
  0xfb   : > { %1006 = dma.done.wait (%p759_p11), %s586_s13, 256  }
  0xfc   : > { %1008 = vsyncadd (%p759_p11), %s586_s13, 4294967040  ;;  %s21_s25 = sadd.s32 1, %s1051_s25   ;;  %s1643_s10 = sld [smem:[#allocation9_spill]] }
  0xfd   : > { %p18_p12 = scmp.ge.s32.totalorder %s21_s25, 10   ;;  %s1644_s20 = sld [smem:[#allocation14_spill]] }
  0xfe   : > { %s1645_s21 = sld [smem:[#allocation10_spill]]  ;;  %s1649_s15 = smov %s1015_s16 }
  0xff   : > { %s1646_s22 = sld [smem:[#allocation11_spill]]  ;;  %s1650_s16 = smov %s1019_s17 }
 0x100   : > { %s1647_s23 = sld [smem:[#allocation12_spill]]  ;;  %s1651_s17 = smov %s1191_s14 }
 0x101   : > { %s1648_s24 = sld [smem:[#allocation13_spill]]  ;;  %s1652_s18 = smov %s1027_s19 }
 0x102   : > { %s1653_s19 = smov %s1643_s10  ;;  %20 = sbr.rel (!%p18_p12) target bundleno = 9 (0x9), region = 99 }
 0x107   :  { %602 = vsyncpa [#allocation3], 1 }
 0x108   :  { %604 = vsyncpa [#allocation3 + $0x1], 1 }
 0x109   :  { %605 = vsyncpa [#allocation5], 1 }
 0x10a   :  { %607 = vsyncpa [#allocation5 + $0x1], 1 }

</bundles_post_ra>
